<compile_context>
chip_gen: v7x
topology: tpu7x:2x2x1
jax: 0.10.0
libtpu: 0.0.40
codegen_flags: <defaults>
</compile_context>

<pallas_src>
import jax
import jax.numpy as jnp
from jax.experimental import pallas as pl
from jax.experimental.pallas import tpu as pltpu


def _rope_kernel(x_ref, cos_ref, sinf_ref, o_ref):
    """x_ref/o_ref: (1, TS, D); cos_ref/sinf_ref: (TS, D//2) float32.

    sinf_ref already carries the rotate sign pattern (its last column is
    negated), so per half the math is  out = x*cos + roll_by_one(x)*sin_fold.
    Pure VPU math plus one XLU vrot per half; no MXU, no full-tile temporaries.
    """
    half = cos_ref.shape[-1]
    cos = cos_ref[...]
    sinf = sinf_ref[...]

    x1 = x_ref[0, :, :half].astype(jnp.float32)
    x2 = x_ref[0, :, half:].astype(jnp.float32)

    # roll(x, half-1) == roll(x, -1):  s[j] = x[(j+1) % half]  (single XLU vrot)
    s1 = pltpu.roll(x1, shift=half - 1, axis=1)
    s2 = pltpu.roll(x2, shift=half - 1, axis=1)

    o_ref[0, :, :half] = (x1 * cos + s1 * sinf).astype(o_ref.dtype)
    o_ref[0, :, half:] = (x2 * cos + s2 * sinf).astype(o_ref.dtype)


def make_rope_caches(dim, max_seq_len, base=10000.0):
    """Reproduces the module's __init__ buffers plus the sign-folded sin table."""
    half_dim = dim // 2
    # The PyTorch module only produces a D//2-wide cache when dim//2 is even.
    assert half_dim % 2 == 0, "dim // 2 must be even (matches the PyTorch module)"
    freqs = 1.0 / base ** (jnp.arange(0, half_dim, 2, dtype=jnp.float32) / half_dim)
    pos = jnp.arange(max_seq_len, dtype=jnp.float32)
    freqs = pos[:, None] * freqs[None, :]                       # (max_seq_len, half_dim//2)
    cos_cached = jnp.repeat(jnp.cos(freqs), 2, axis=1)          # (max_seq_len, half_dim)
    sin_cached = jnp.repeat(jnp.sin(freqs), 2, axis=1)
    # rot(v) = cat([-v[...,1:], v[...,:1]], -1) = roll(v, -1) * [-1,...,-1,+1]
    # => v*cos - rot(v)*sin == v*cos + roll(v, -1) * (sin * [1,...,1,-1]).
    # Fold that sign into the cache once (no per-call wrapper multiply).
    sin_folded = sin_cached.at[:, -1].multiply(-1.0)
    return cos_cached, sin_cached, sin_folded


def _pick_seq_tile(seq_len, dim, batch, elem_bytes,
                   *, max_block_bytes=4 << 20, min_steps=2):
    """Largest power-of-two seq tile with a <= ~4 MiB x block, then shrunk (if
    possible) so the grid has at least `min_steps` steps for v7x's two TCs."""
    ts = 8
    while (ts * 2 <= seq_len and ts * 2 <= 4096
           and ts * 2 * dim * elem_bytes <= max_block_bytes):
        ts *= 2
    if ts >= seq_len:
        ts = seq_len          # single full-seq tile (block dim == full array dim)
    while pl.cdiv(seq_len, ts) * batch < min_steps and ts > 16 and ts % 16 == 0:
        ts //= 2
    return ts


def rope_forward(x, cos_cached, sin_folded, offset=0, seq_tile=None):
    """Pallas implementation of RotaryPositionalEmbedding.forward(x, offset).

    `offset` must be a static Python int (same as the PyTorch module's default use).
    """
    # TODO(synk): a traced / decode-time offset would need PrefetchScalarGridSpec
    # scalar prefetch with the cache rows selected inside the index_map.
    B, S, D = x.shape
    half = D // 2
    cos = cos_cached[offset:offset + S].astype(jnp.float32)     # (S, D//2)
    sinf = sin_folded[offset:offset + S].astype(jnp.float32)    # sign-folded sin

    ts = _pick_seq_tile(S, D, B, x.dtype.itemsize) if seq_tile is None else seq_tile

    # Ragged S: pad up to a tile multiple (padded rows are sliced off below),
    # instead of collapsing to one giant, possibly VMEM-busting block.
    s_pad = ts * pl.cdiv(S, ts)
    if s_pad != S:
        x = jnp.pad(x, ((0, 0), (0, s_pad - S), (0, 0)))
        cos = jnp.pad(cos, ((0, s_pad - S), (0, 0)))
        sinf = jnp.pad(sinf, ((0, s_pad - S), (0, 0)))

    grid = (s_pad // ts, B)   # batch innermost -> cos/sin tile stays resident

    # Double-buffered x + out blocks plus the two half-width f32 tables.
    block_bytes = ts * D * x.dtype.itemsize
    table_bytes = ts * half * 4
    vmem_limit = int(min(64 << 20,
                         max(32 << 20, 4 * block_bytes + 4 * table_bytes + (2 << 20))))

    out = pl.pallas_call(
        _rope_kernel,
        out_shape=jax.ShapeDtypeStruct((B, s_pad, D), x.dtype),
        grid=grid,
        in_specs=[
            pl.BlockSpec((1, ts, D), lambda s, b: (b, s, 0)),    # x tile
            pl.BlockSpec((ts, half), lambda s, b: (s, 0)),       # cos (seq-keyed only)
            pl.BlockSpec((ts, half), lambda s, b: (s, 0)),       # sign-folded sin
        ],
        out_specs=pl.BlockSpec((1, ts, D), lambda s, b: (b, s, 0)),
        compiler_params=pltpu.CompilerParams(
            dimension_semantics=("parallel", "parallel"),
            vmem_limit_bytes=vmem_limit),
    )(x, cos, sinf)
    return out if s_pad == S else out[:, :S]


def rope_reference(x, cos_cached, sin_cached, offset=0):
    """Pure-JAX transcription of the PyTorch forward for correctness checking."""
    S = x.shape[1]
    cos = cos_cached[offset:offset + S][None]
    sin = sin_cached[offset:offset + S][None]
    x1, x2 = jnp.split(x, 2, axis=-1)

    def rot(v):
        return jnp.concatenate([-v[..., 1:], v[..., :1]], axis=-1)

    x1r = x1 * cos - rot(x1) * sin
    x2r = x2 * cos - rot(x2) * sin
    return jnp.concatenate([x1r, x2r], axis=-1)


if __name__ == "__main__":
    dim = 256          # half = 128 -> lane-dense, 128-aligned half loads/stores
    max_seq_len = 32
    batch, seq_len = 2, 16
    offset = 4         # exercise a non-zero (static) position offset

    cos_cached, sin_cached, sin_folded = make_rope_caches(dim, max_seq_len, base=10000.0)

    key = jax.random.PRNGKey(0)
    x = jax.random.normal(key, (batch, seq_len, dim), dtype=jnp.float32)

    # float32 I/O path
    out = jax.block_until_ready(rope_forward(x, cos_cached, sin_folded, offset=offset))
    ref = rope_reference(x, cos_cached, sin_cached, offset=offset)
    assert out.shape == (batch, seq_len, dim)
    assert jnp.allclose(out, ref, atol=1e-5, rtol=1e-5)

    # bfloat16 I/O path (kernel promotes to f32 internally, casts only at the store)
    x_bf16 = x.astype(jnp.bfloat16)
    out_bf16 = jax.block_until_ready(
        rope_forward(x_bf16, cos_cached, sin_folded, offset=offset))
    ref_bf16 = rope_reference(x_bf16.astype(jnp.float32), cos_cached, sin_cached,
                              offset=offset)
    assert out_bf16.dtype == jnp.bfloat16
    assert jnp.allclose(out_bf16.astype(jnp.float32), ref_bf16, atol=2e-2, rtol=2e-2)

    print("KERNEL_OK")
</pallas_src>

<mosaic_0001>
module attributes {stable_mosaic.version = 11 : i64} {
  func.func @_rope_kernel(%arg0: i32, %arg1: i32, %arg2: memref<1x16x256xf32, #tpu.memory_space<vmem>>, %arg3: memref<16x128xf32, #tpu.memory_space<vmem>>, %arg4: memref<16x128xf32, #tpu.memory_space<vmem>>, %arg5: memref<1x16x256xf32, #tpu.memory_space<vmem>>) attributes {dimension_semantics = [#tpu.dimension_semantics<parallel>, #tpu.dimension_semantics<parallel>], iteration_bounds = array<i64: 1, 2>, scalar_prefetch = 0 : i64, scratch_operands = 0 : i64, tpu.core_type = #tpu.core_type<tc>, window_params = [{transform_indices = @transform_0, window_bounds = array<i64: 1, 16, 256>}, {transform_indices = @transform_1, window_bounds = array<i64: 16, 128>}, {transform_indices = @transform_2, window_bounds = array<i64: 16, 128>}, {transform_indices = @transform_3, window_bounds = array<i64: 1, 16, 256>}]} {
    %c0 = arith.constant 0 : index
    %c0_0 = arith.constant 0 : index
    %0 = vector.load %arg3[%c0, %c0_0] : memref<16x128xf32, #tpu.memory_space<vmem>>, vector<16x128xf32>
    %c0_1 = arith.constant 0 : index
    %c0_2 = arith.constant 0 : index
    %1 = vector.load %arg4[%c0_1, %c0_2] : memref<16x128xf32, #tpu.memory_space<vmem>>, vector<16x128xf32>
    %c0_3 = arith.constant 0 : index
    %c0_4 = arith.constant 0 : index
    %c0_5 = arith.constant 0 : index
    %2 = vector.load %arg2[%c0_3, %c0_4, %c0_5] : memref<1x16x256xf32, #tpu.memory_space<vmem>>, vector<1x16x128xf32>
    %3 = vector.shape_cast %2 : vector<1x16x128xf32> to vector<16x128xf32>
    %c0_6 = arith.constant 0 : index
    %c0_7 = arith.constant 0 : index
    %c128 = arith.constant 128 : index
    %4 = vector.load %arg2[%c0_6, %c0_7, %c128] : memref<1x16x256xf32, #tpu.memory_space<vmem>>, vector<1x16x128xf32>
    %5 = vector.shape_cast %4 : vector<1x16x128xf32> to vector<16x128xf32>
    %c127_i32 = arith.constant 127 : i32
    %6 = tpu.dynamic_rotate %3 by %c127_i32 dim 1 : vector<16x128xf32>, i32 -> vector<16x128xf32>
    %c127_i32_8 = arith.constant 127 : i32
    %7 = tpu.dynamic_rotate %5 by %c127_i32_8 dim 1 : vector<16x128xf32>, i32 -> vector<16x128xf32>
    %8 = arith.mulf %3, %0 : vector<16x128xf32>
    %9 = arith.mulf %6, %1 : vector<16x128xf32>
    %10 = arith.addf %8, %9 : vector<16x128xf32>
    %c0_9 = arith.constant 0 : index
    %c0_10 = arith.constant 0 : index
    %c0_11 = arith.constant 0 : index
    %11 = vector.load %arg5[%c0_9, %c0_10, %c0_11] : memref<1x16x256xf32, #tpu.memory_space<vmem>>, vector<1x16x128xf32>
    %12 = vector.shape_cast %11 : vector<1x16x128xf32> to vector<16x128xf32>
    %13 = vector.shape_cast %10 : vector<16x128xf32> to vector<1x16x128xf32>
    tpu.vector_store %arg5[%c0_9, %c0_10, %c0_11], %13 {strides = array<i32>} : memref<1x16x256xf32, #tpu.memory_space<vmem>>, vector<1x16x128xf32>,
    %14 = arith.mulf %5, %0 : vector<16x128xf32>
    %15 = arith.mulf %7, %1 : vector<16x128xf32>
    %16 = arith.addf %14, %15 : vector<16x128xf32>
    %c0_12 = arith.constant 0 : index
    %c0_13 = arith.constant 0 : index
    %c128_14 = arith.constant 128 : index
    %17 = vector.load %arg5[%c0_12, %c0_13, %c128_14] : memref<1x16x256xf32, #tpu.memory_space<vmem>>, vector<1x16x128xf32>
    %18 = vector.shape_cast %17 : vector<1x16x128xf32> to vector<16x128xf32>
    %19 = vector.shape_cast %16 : vector<16x128xf32> to vector<1x16x128xf32>
    tpu.vector_store %arg5[%c0_12, %c0_13, %c128_14], %19 {strides = array<i32>} : memref<1x16x256xf32, #tpu.memory_space<vmem>>, vector<1x16x128xf32>,
    return
  }
  func.func @transform_0(%arg0: i32, %arg1: i32) -> (i32, i32, i32) {
    %c0_i32 = arith.constant 0 : i32
    %c0_i32_0 = arith.constant 0 : i32
    return %arg1, %arg0, %c0_i32 : i32, i32, i32
  }
  func.func @transform_1(%arg0: i32, %arg1: i32) -> (i32, i32) {
    %c0_i32 = arith.constant 0 : i32
    %c0_i32_0 = arith.constant 0 : i32
    return %arg0, %c0_i32 : i32, i32
  }
  func.func @transform_2(%arg0: i32, %arg1: i32) -> (i32, i32) {
    %c0_i32 = arith.constant 0 : i32
    %c0_i32_0 = arith.constant 0 : i32
    return %arg0, %c0_i32 : i32, i32
  }
  func.func @transform_3(%arg0: i32, %arg1: i32) -> (i32, i32, i32) {
    %c0_i32 = arith.constant 0 : i32
    %c0_i32_0 = arith.constant 0 : i32
    return %arg1, %arg0, %c0_i32 : i32, i32, i32
  }
}

</mosaic_0001>

<bundles_post_ra>
// kernel: tpu_custom_call.1
= control target key start
LH: loop header
LB: loop body
LE: loop exit
PB: predicated region body
PF: predicated region fallthrough
CT: control target
= control target key end

     0   :  { %8 = vsyncpa [#allocation3], 0  ;;  %s987_s0 = inlined_call_operand.hbm [shape: f32[2,16,256], index: 0, kind: input, shape index: {}]   ;;  %s988_s1 = inlined_call_operand.hbm [shape: f32[16,128], index: 1, kind: input, shape index: {}]   ;;  %s989_s2 = inlined_call_operand.hbm [shape: f32[16,128], index: 2, kind: input, shape index: {}]   ;;  %s990_s3 = inlined_call_operand.hbm [shape: f32[2,16,256], index: 3, kind: output, shape index: {}]  }
   0x1   :  { %10 = vsyncpa [#allocation3 + $0x1], 0 }
   0x2   :  { %11 = vsyncpa [#allocation6], 0 }
   0x3   :  { %12 = vsyncpa [#allocation4], 0 }
   0x4   :  { %14 = vsyncpa [#allocation4 + $0x1], 0  ;;  %s732_s12 = smov 0   ;;  %s734_s13 = smov 0  }
   0x5   :  { %s736_s14 = smov 0   ;;  %s738_s15 = smov 0  }
   0x6   :  { %s740_s16 = smov 0   ;;  %s742_s17 = smov 0  }
   0x7 LB: > { %s416_s18 = sadd.s32 4294967295, %s699_s17   ;;  %s417_s19 = sadd.s32 4294967294, %s699_s17   ;;  %s699_s17 = sphi %s742_s17, %s20_s17   ;;  %s695_s16 = sphi %s740_s16, %s1012_s16   ;;  %s691_s15 = sphi %s738_s15, %s1011_s15   ;;  %s687_s14 = sphi %s736_s14, %s1010_s14   ;;  %s683_s13 = sphi %s734_s13, %s1009_s13   ;;  %s679_s12 = sphi %s732_s12, %s1008_s12  }
   0x8   : > { %p54_p0 = scmp.ne.s32.totalorder %s683_s13, %s679_s12  ;;  %p766_p1 = scmp.eq.s32.totalorder %s416_s18, 0 }
   0x9   : > { %p770_p2 = scmp.eq.s32.totalorder %s416_s18, 1  ;;  %p138_p3 = scmp.eq.s32.totalorder %s417_s19, 1 }
   0xa   : > { %s995_s20 = scalar_select %p766_p1, 1, 0 }
   0xb   : > { %p776_p4 = por %p766_p1, %p54_p0  ;;  %p418_p5 = scmp.ge.s32.totalorder %s699_s17, 1 }
   0xc   : > { %p781_p6 = por %p138_p3, %p54_p0  ;;  %p145_p7 = scmp.lt.s32.totalorder %s699_s17, 3 }
   0xd   : > { %s997_s22 = scalar_select %p776_p4, 1, 0 }
   0xe   : > { %s998_s23 = scalar_select %p781_p6, 1, 0 }
   0xf   : > { %p786_p8 = pnand %p418_p5, %p145_p7  ;;  %s701_s25 = smov [#allocation5]  }
  0x10   : > { %s160_s26 = sshll.u32 %s701_s25, 4  ;;  %s702_s28 = smov [#allocation7]   ;;  %s790_s26 = int_to_ptr.vmem [resolvable:$true] %s160_s26 }
  0x11   : > { %p449_p9 = pneg %p786_p8  ;;  %s176_s29 = sshll.u32 %s702_s28, 4  ;;  %s801_s29 = int_to_ptr.vmem [resolvable:$true] %s176_s29 }
  0x12   : > { %s527_s5 = scalar_lea.hbm %s988_s1, 256 }
  0x13   : > { %p797_p11 = pnand %p449_p9, %p766_p1  ;;  %p528_p12 = scmp.ne.s32.totalorder %s988_s1, %s527_s5 }
  0x14   : > { %p534_p5 = scmp.lt.u32.totalorder %s527_s5, %s988_s1 }
  0x15   : > { %p529_p13 = pneg %p797_p11 }
  0x17   : > { %p530_p0 = pnand %p529_p13, %p528_p12 }
  0x19   : > { %p531_p3 = pneg %p530_p0 }
  0x1b   : > { %p536_p7 = pnand %p534_p5, %p531_p3 }
  0x1d   : > { %539 = shalt.err (!%p536_p7)
}
  0x1e   : > { %s540_s10 = scalar_lea.vmem %s790_s26, 256  ;;  %p548_p1 = scmp.lt.s32.totalorder %s790_s26, %s790_s26 }
  0x1f   : > { %p541_p9 = scmp.ne.s32.totalorder %s790_s26, %s540_s10  ;;  %p549_p12 = scmp.lt.s32.totalorder %s540_s10, %s540_s10 }
  0x21   : > { %p543_p10 = pnand %p541_p9, %p529_p13  ;;  %p550_p0 = por %p549_p12, %p548_p1 }
  0x23   : > { %p544_p6 = pneg %p543_p10 }
  0x25   : > { %p551_p4 = pnand %p550_p0, %p544_p6 }
  0x27   : > { %554 = shalt.err (!%p551_p4)
}
  0x28   : > { %s703_s11 = smov 128   ;;  %s704_s18 = smov 8  }
  0x29   : > { %452 = dma.hbm_to_vmem [thread:$0]  (!%p797_p11), %s988_s1, 256, %s790_s26, [#allocation6], %s703_s11, %s703_s11, %s704_s18  }
  0x2a   : > { %s555_s4 = scalar_lea.hbm %s989_s2, 256 }
  0x2b   : > { %p556_p1 = scmp.ne.s32.totalorder %s989_s2, %s555_s4  ;;  %p562_p10 = scmp.lt.u32.totalorder %s555_s4, %s989_s2 }
  0x2d   : > { %p558_p4 = pnand %p556_p1, %p529_p13 }
  0x2f   : > { %p559_p6 = pneg %p558_p4 }
  0x31   : > { %p564_p3 = pnand %p562_p10, %p559_p6 }
  0x33   : > { %567 = shalt.err (!%p564_p3)
}
  0x34   : > { %s568_s26 = scalar_lea.vmem %s801_s29, 256  ;;  %p576_p12 = scmp.lt.s32.totalorder %s801_s29, %s801_s29 }
  0x35   : > { %p569_p5 = scmp.ne.s32.totalorder %s801_s29, %s568_s26  ;;  %p577_p0 = scmp.lt.s32.totalorder %s568_s26, %s568_s26 }
  0x37   : > { %p571_p7 = pnand %p569_p5, %p529_p13  ;;  %p578_p1 = por %p577_p0, %p576_p12 }
  0x39   : > { %p572_p9 = pneg %p571_p7 }
  0x3b   : > { %p579_p4 = pnand %p578_p1, %p572_p9 }
  0x3d   : > { %582 = shalt.err (!%p579_p4)
}
  0x3e   : > { %455 = dma.hbm_to_vmem [thread:$0]  (!%p797_p11), %s989_s2, 256, %s801_s29, [#allocation6], %s703_s11, %s703_s11, %s704_s18  }
  0x3f   : > { %s29_s19 = sadd.s32 1, %s695_s16  ;;  %s41_s25 = sadd.s32 1, %s687_s14 }
  0x40   : > { %p30_p13 = scmp.ge.s32.totalorder %s29_s19, 2  ;;  %p48_p6 = scmp.ne.s32.totalorder %s687_s14, %s683_s13 }
  0x41   : > { %p49_p10 = scmp.eq.s32.totalorder %s699_s17, 0  ;;  %p466_p3 = scmp.lt.s32.totalorder %s699_s17, 2 }
  0x42   : > { %s1014_s19 = smov (%p30_p13, %s29_s19), 0  ;;  %p865_p7 = por %p770_p2, %p48_p6 }
  0x43   : > { %p50_p5 = por %p49_p10, %p48_p6  ;;  %s36_s28 = ssub.s32 %s695_s16, %s1014_s19 }
  0x44   : > { %s1001_s27 = scalar_select %p865_p7, 1, 0 }
  0x45   : > { %s190_s30 = sand.u32 1, %s687_s14   ;;  %p39_p9 = scmp.eq.s32.totalorder %s36_s28, 0 }
  0x46   : > { %s422_s29 = sshll.u32 %s190_s30, 5  ;;  %s435_s11 = sshll.u32 %s695_s16, 9 }
  0x47   : > { %s874_s18 = scalar_select %p39_p9, %s687_s14, %s41_s25  }
  0x48   : > { %s879_s6 = scalar_lea.hbm %s987_s0, %s435_s11  ;;  %s194_s21 = scalar_lea.vmem [#allocation2], %s422_s29 }
  0x49   : > { %s204_s7 = sshll.u32 %s194_s21, 4  ;;  %p883_p2 = pnand %p466_p3, %p50_p5  ;;  %s887_s7 = int_to_ptr.vmem [resolvable:$true] %s204_s7 }
  0x4a   : > { %s889_s26 = scalar_lea.sflag [#allocation3], %s190_s30  ;;  %s583_s9 = scalar_lea.hbm %s879_s6, 512 }
  0x4b   : > { %p584_p11 = scmp.ne.s32.totalorder %s879_s6, %s583_s9  ;;  %p585_p12 = pneg %p883_p2 }
  0x4c   : > { %s588_s28 = scalar_lea.hbm %s987_s0, 1024  ;;  %p589_p4 = scmp.lt.u32.totalorder %s879_s6, %s987_s0 }
  0x4d   : > { %p586_p0 = pnand %p585_p12, %p584_p11  ;;  %p590_p13 = scmp.lt.u32.totalorder %s588_s28, %s583_s9 }
  0x4e   : > { %p592_p10 = scmp.lt.u32.totalorder %s583_s9, %s879_s6 }
  0x4f   : > { %p587_p1 = pneg %p586_p0  ;;  %p591_p6 = por %p590_p13, %p589_p4 }
  0x51   : > { %p593_p3 = por %p592_p10, %p591_p6 }
  0x53   : > { %p594_p5 = pnand %p593_p3, %p587_p1 }
  0x55   : > { %597 = shalt.err (!%p594_p5)
}
  0x56   : > { %s598_s30 = scalar_lea.vmem %s887_s7, 512  ;;  %s705_s4 = smov [#allocation2]  }
  0x57   : > { %p599_p9 = scmp.ne.s32.totalorder %s887_s7, %s598_s30  ;;  %s603_s5 = sshll.u32 %s705_s4, 4  ;;  %s604_s5 = int_to_ptr.vmem [resolvable:$false] %s603_s5 }
  0x58   : > { %s605_s21 = scalar_lea.vmem %s604_s5, 1024  ;;  %p606_p7 = scmp.lt.s32.totalorder %s887_s7, %s604_s5 }
  0x59   : > { %p601_p11 = pnand %p599_p9, %p585_p12  ;;  %p607_p4 = scmp.lt.s32.totalorder %s605_s21, %s598_s30 }
  0x5b   : > { %p602_p0 = pneg %p601_p11  ;;  %p608_p13 = por %p607_p4, %p606_p7 }
  0x5d   : > { %p609_p6 = pnand %p608_p13, %p602_p0 }
  0x5f   : > { %612 = shalt.err (!%p609_p6)
}
  0x60   : > { %s706_s9 = smov 256   ;;  %s707_s10 = smov 16  }
  0x61   : > { %459 = dma.hbm_to_vmem [thread:$0]  (!%p883_p2), %s879_s6, 512, %s887_s7, %s889_s26, %s706_s9, %s706_s9, %s707_s10  }
  0x62   : > { %216 = sbr.rel (%p786_p8) target bundleno = 248 (0xf8), region = 32  ;;  %s920_s25 = sand.u32 (!%p786_p8), 1, %s683_s13  }
  0x63   : > { %s426_s28 = sshll.u32 (!%p786_p8), %s920_s25, 5  ;;  %s219_s29 = scalar_lea.sflag (!%p786_p8), [#allocation3], %s920_s25 }
  0x64   : > { %s222_s11 = scalar_lea.vmem (!%p786_p8), [#allocation2], %s426_s28  ;;  %p1003_p7 = scmp.ne.s32.totalorder (!%p786_p8), %s997_s22, 0 }
  0x69   : > { %666 = dma.done.wait (%p1003_p7), %s219_s29, 512  }
  0x6a   : > { %668 = vsyncadd (%p1003_p7), %s219_s29, 4294966784  ;;  %p1004_p12 = scmp.ne.s32.totalorder %s995_s20, 0 }
  0x6c   : > { %670 = dma.done.wait (%p1004_p12), [#allocation6], 512  }
  0x6d   : > { %672 = vsyncadd (%p1004_p12), [#allocation6], 4294966784  ;;  %v263_v0 = vld [vmem:[%s222_s11 + $0x8] sm:$0xff]  ;;  %v261_v1 = vld [vmem:[%s222_s11] sm:$0xff]  ;;  %s708_s24 = smov 127   ;;  %s252_s20 = scalar_lea.vmem [#allocation8], %s426_s28 }
  0x6e   : > { %269 = vrot.lane.b32.xlu1 %v263_v0, %s708_s24  ;;  %265 = vrot.lane.b32.xlu0 %v261_v1, %s708_s24  ;;  %v264_v2 = vld [vmem:[%s222_s11 + $0x18] sm:$0xff]  ;;  %v262_v3 = vld [vmem:[%s222_s11 + $0x10] sm:$0xff]  ;;  %v257_v4 = vld [vmem:[#allocation5] sm:$0xff]  ;;  %s306_s22 = sshll.u32 %s252_s20, 4  ;;  %s436_s6 = sshll.u32 %s691_s15, 9  ;;  %s933_s22 = int_to_ptr.vmem [resolvable:$true] %s306_s22 }
  0x6f   : > { %v259_v5 = vld [vmem:[#allocation7] sm:$0xff]  ;;  %v281_v6 = vmul.f32 %v263_v0, %v257_v4  ;;  %v273_v7 = vmul.f32 %v261_v1, %v257_v4  ;;  %v258_v8 = vld [vmem:[#allocation5 + $0x8] sm:$0xff]  ;;  %v260_v13 = vld [vmem:[#allocation7 + $0x8] sm:$0xff]  ;;  %s938_s26 = scalar_lea.hbm %s990_s3, %s436_s6  ;;  %s290_s15 = scalar_lea.sflag [#allocation4], %s920_s25 }
  0x70   : > { %v282_v14 = vmul.f32 %v264_v2, %v258_v8  ;;  %v274_v15 = vmul.f32 %v262_v3, %v258_v8  ;;  %s613_s30 = scalar_lea.vmem %s933_s22, 512  ;;  %p1005_p2 = scmp.ne.s32.totalorder %s1001_s27, 0 }
  0x71   : > { %p614_p8 = scmp.ne.s32.totalorder %s933_s22, %s613_s30  ;;  %s709_s4 = smov [#allocation8]  }
  0x72   : > { %271 = vrot.lane.b32.xlu1 %v264_v2, %s708_s24  ;;  %267 = vrot.lane.b32.xlu0 %v262_v3, %s708_s24  ;;  %s617_s5 = sshll.u32 %s709_s4, 4  ;;  %s618_s5 = int_to_ptr.vmem [resolvable:$false] %s617_s5 }
  0x73   : > { %p615_p1 = pnand %p614_p8, %p1005_p2  ;;  %s619_s21 = scalar_lea.vmem %s618_s5, 1024 }
  0x74   : > { %p620_p3 = scmp.lt.s32.totalorder %s933_s22, %s618_s5  ;;  %p621_p5 = scmp.lt.s32.totalorder %s619_s21, %s613_s30 }
  0x75   : > { %p616_p10 = pneg %p615_p1 }
  0x76   : > { %p622_p9 = por %p621_p5, %p620_p3 }
  0x78   : > { %p623_p11 = pnand %p622_p9, %p616_p10 }
  0xe0   : > { %v270_v9 = vpop.permute.xlu1 %269  ;;  %v266_v10 = vpop.permute.xlu0 %265 }
  0xe1   : > { %v283_v11 = vmul.f32 %v270_v9, %v259_v5  ;;  %v275_v12 = vmul.f32 %v266_v10, %v259_v5 }
  0xe3   : > { %v285_v16 = vadd.f32 %v283_v11, %v281_v6  ;;  %v277_v17 = vadd.f32 %v275_v12, %v273_v7 }
  0xe4   : > { %v272_v18 = vpop.permute.xlu1 %271  ;;  %v268_v19 = vpop.permute.xlu0 %267 }
  0xe5   : > { %287 = vst [vmem:[%s252_s20 + $0x8] sm:$0xff] %v285_v16  ;;  %279 = vst [vmem:[%s252_s20] sm:$0xff] %v277_v17  ;;  %v284_v20 = vmul.f32 %v272_v18, %v260_v13  ;;  %v276_v21 = vmul.f32 %v268_v19, %v260_v13 }
  0xe7   : > { %v286_v22 = vadd.f32 %v284_v20, %v282_v14  ;;  %v278_v23 = vadd.f32 %v276_v21, %v274_v15 }
  0xe9   : > { %288 = vst [vmem:[%s252_s20 + $0x18] sm:$0xff] %v286_v22  ;;  %280 = vst [vmem:[%s252_s20 + $0x10] sm:$0xff] %v278_v23 }
  0xea   : > { %626 = shalt.err (!%p623_p11)
}
  0xeb   : > { %s627_s9 = scalar_lea.hbm %s938_s26, 512  ;;  %s631_s29 = scalar_lea.hbm %s990_s3, 1024 }
  0xec   : > { %p628_p0 = scmp.ne.s32.totalorder %s938_s26, %s627_s9  ;;  %p632_p6 = scmp.lt.u32.totalorder %s938_s26, %s990_s3 }
  0xed   : > { %p633_p7 = scmp.lt.u32.totalorder %s631_s29, %s627_s9  ;;  %p635_p8 = scmp.lt.u32.totalorder %s627_s9, %s938_s26 }
  0xee   : > { %p629_p4 = pnand %p628_p0, %p1005_p2 }
  0xef   : > { %p634_p12 = por %p633_p7, %p632_p6 }
  0xf0   : > { %p630_p13 = pneg %p629_p4 }
  0xf1   : > { %p636_p1 = por %p635_p8, %p634_p12 }
  0xf3   : > { %p637_p10 = pnand %p636_p1, %p630_p13 }
  0xf5   : > { %640 = shalt.err (!%p637_p10)
}
  0xf6   : > { %s710_s20 = smov 256   ;;  %s711_s6 = smov 16  }
  0xf7   : > { %447 = dma.vmem_to_hbm [thread:$0]  (%p1005_p2), %s933_s22, 512, %s938_s26, %s290_s15, %s710_s20, %s710_s20, %s711_s6  }
  0xf8 PF: > { %s321_s7 = sand.u32 1, %s679_s12   ;;  %p1006_p3 = scmp.ne.s32.totalorder %s998_s23, 0 }
  0xf9   : > { %p1007_p5 = scmp.ge.s32.totalorder %s699_s17, 2  ;;  %s322_s8 = scalar_lea.sflag [#allocation4], %s321_s7 }
  0xfb   : > { %p461_p9 = pnand %p1007_p5, %p1006_p3 }
  0xfd   : > { %674 = dma.done.wait (!%p461_p9), %s322_s8, 512  }
  0xfe   : > { %676 = vsyncadd (!%p461_p9), %s322_s8, 4294966784  ;;  %s20_s17 = sadd.s32 1, %s699_s17   ;;  %s1008_s12 = smov %s683_s13 }
  0xff   : > { %p17_p11 = scmp.ge.s32.totalorder %s20_s17, 4   ;;  %s1009_s13 = smov %s687_s14 }
 0x100   : > { %s1010_s14 = smov %s874_s18  ;;  %s1011_s15 = smov %s695_s16 }
 0x101   : > { %s1012_s16 = smov %s1014_s19  ;;  %19 = sbr.rel (!%p17_p11) target bundleno = 7 (0x7), region = 87 }
 0x108   :  { %327 = vsyncpa [#allocation3], 1 }
 0x109   :  { %329 = vsyncpa [#allocation3 + $0x1], 1 }
 0x10a   :  { %330 = vsyncpa [#allocation6], 1 }
 0x10b   :  { %331 = vsyncpa [#allocation4], 1 }
 0x10c   :  { %333 = vsyncpa [#allocation4 + $0x1], 1 }

</bundles_post_ra>
